<compile_context>
chip_gen: v6e
topology: v6e:2x2x1
jax: 0.10.0
libtpu: 0.0.40
codegen_flags: <defaults>
</compile_context>

<pallas_src>
import jax
import jax.numpy as jnp
from jax import lax
from jax.experimental import pallas as pl
from jax.experimental.pallas import tpu as pltpu

MXU_DTYPE = jnp.bfloat16          # matmul operand dtype (accumulate in f32)
_VMEM_LIMIT = 48 * 1024 * 1024    # leaves headroom under v7x's 64 MiB physical VMEM


def _round_up(x, m):
    return ((x + m - 1) // m) * m


def _cparams(*semantics):
    return pltpu.CompilerParams(dimension_semantics=semantics,
                                vmem_limit_bytes=_VMEM_LIMIT)


def _row_tiling(n_rows):
    # Whole array in one block when small; 256-row tiles (matches the 256-wide MXU
    # on v6e/v7x) with a parallel grid when large.
    if n_rows <= 512:
        return n_rows, n_rows
    tile = 256
    return tile, _round_up(n_rows, tile)


# ---------------------------------------------------------------------------
# Pallas kernels
# ---------------------------------------------------------------------------

def _embed_gi_kernel(x_ref, w_in_ref, b_in_ref, w_ih_ref, b_gi_ref, gi_ref):
    # Fused: relu(x @ W_in^T + b_in) @ W_ih^T + (b_ih + [b_hr, b_hz, 0])
    emb = jnp.dot(x_ref[...].astype(MXU_DTYPE), w_in_ref[...],
                  preferred_element_type=jnp.float32) + b_in_ref[...]
    emb = jnp.maximum(emb, 0.0)
    gi = jnp.dot(emb.astype(MXU_DTYPE), w_ih_ref[...],
                 preferred_element_type=jnp.float32) + b_gi_ref[...]
    gi_ref[...] = gi


def _gi_kernel(h_ref, w_ih_ref, b_gi_ref, gi_ref):
    # gi = h_prev_layer @ W_ih^T + (b_ih + [b_hr, b_hz, 0])
    gi_ref[...] = jnp.dot(h_ref[...].astype(MXU_DTYPE), w_ih_ref[...],
                          preferred_element_type=jnp.float32) + b_gi_ref[...]


def _output_mlp_kernel(x_ref, w1_ref, b1_ref, w2_ref, b2_ref, o_ref):
    # Linear -> ReLU -> Linear, weights already transposed to (in, out).
    h = jnp.dot(x_ref[...].astype(MXU_DTYPE), w1_ref[...],
                preferred_element_type=jnp.float32) + b1_ref[...]
    h = jnp.maximum(h, 0.0)
    y = jnp.dot(h.astype(MXU_DTYPE), w2_ref[...],
                preferred_element_type=jnp.float32) + b2_ref[...]
    o_ref[...] = y.astype(o_ref.dtype)


def _gru_rec_kernel(gi_ref, h0_ref, whh_ref, bhn_ref, out_ref, h_scr):
    # One grid step == one time-chunk of Tc timesteps; hidden carried in VMEM scratch.
    # gi_ref : (Tc, Bp, 3*Hp)  precomputed x@W_ih^T + b_ih + [b_hr, b_hz, 0]  (f32)
    # h0_ref : (Bp, Hp)        initial hidden for this layer
    # whh_ref: (Hp, 3*Hp)      W_hh^T  (bf16; gate order r, z, n -- PyTorch)
    # bhn_ref: (1, Hp)         b_hn (n-gate hh-bias; must stay inside r*(...))
    c = pl.program_id(0)

    @pl.when(c == 0)
    def _():
        h_scr[...] = h0_ref[...]

    Hp = h0_ref.shape[-1]
    Tc = gi_ref.shape[0]
    whh = whh_ref[...]
    bhn = bhn_ref[...]

    def step(t, h):
        gi = gi_ref[t]                                            # (Bp, 3Hp) f32
        gh = jnp.dot(h.astype(MXU_DTYPE), whh,
                     preferred_element_type=jnp.float32)          # (Bp, 3Hp) f32
        r = jax.nn.sigmoid(gi[:, 0:Hp] + gh[:, 0:Hp])
        z = jax.nn.sigmoid(gi[:, Hp:2 * Hp] + gh[:, Hp:2 * Hp])
        n = jnp.tanh(gi[:, 2 * Hp:3 * Hp] + r * (gh[:, 2 * Hp:3 * Hp] + bhn))
        h_new = (1.0 - z) * n + z * h
        out_ref[t] = h_new.astype(out_ref.dtype)
        return h_new

    h_scr[...] = lax.fori_loop(0, Tc, step, h_scr[...], unroll=True)


# ---------------------------------------------------------------------------
# Pallas wrappers
# ---------------------------------------------------------------------------

def embed_gi(x2d, w_in_t, b_in, w_ih_t, b_gi):
    N, Ip = x2d.shape
    Ep = w_in_t.shape[1]
    G = w_ih_t.shape[1]
    tile, Np = _row_tiling(N)
    if Np != N:
        x2d = jnp.pad(x2d, ((0, Np - N), (0, 0)))
    out = pl.pallas_call(
        _embed_gi_kernel,
        out_shape=jax.ShapeDtypeStruct((Np, G), jnp.float32),
        grid_spec=pltpu.PrefetchScalarGridSpec(
            num_scalar_prefetch=0,
            grid=(Np // tile,),
            in_specs=[
                pl.BlockSpec((tile, Ip), lambda i: (i, 0)),
                pl.BlockSpec((Ip, Ep), lambda i: (0, 0)),
                pl.BlockSpec((1, Ep), lambda i: (0, 0)),
                pl.BlockSpec((Ep, G), lambda i: (0, 0)),
                pl.BlockSpec((1, G), lambda i: (0, 0)),
            ],
            out_specs=pl.BlockSpec((tile, G), lambda i: (i, 0)),
        ),
        compiler_params=_cparams("parallel"),
    )(x2d, w_in_t, b_in.reshape(1, -1), w_ih_t, b_gi.reshape(1, -1))
    return out[:N]


def gi_proj(h2d, w_ih_t, b_gi):
    N, Hp = h2d.shape
    G = w_ih_t.shape[1]
    tile, Np = _row_tiling(N)
    if Np != N:
        h2d = jnp.pad(h2d, ((0, Np - N), (0, 0)))
    out = pl.pallas_call(
        _gi_kernel,
        out_shape=jax.ShapeDtypeStruct((Np, G), jnp.float32),
        grid_spec=pltpu.PrefetchScalarGridSpec(
            num_scalar_prefetch=0,
            grid=(Np // tile,),
            in_specs=[
                pl.BlockSpec((tile, Hp), lambda i: (i, 0)),
                pl.BlockSpec((Hp, G), lambda i: (0, 0)),
                pl.BlockSpec((1, G), lambda i: (0, 0)),
            ],
            out_specs=pl.BlockSpec((tile, G), lambda i: (i, 0)),
        ),
        compiler_params=_cparams("parallel"),
    )(h2d, w_ih_t, b_gi.reshape(1, -1))
    return out[:N]


def output_mlp(x2d, w1_t, b1, w2_t, b2):
    N, Hp = x2d.shape
    Ep = w1_t.shape[1]
    Op = w2_t.shape[1]
    tile, Np = _row_tiling(N)
    if Np != N:
        x2d = jnp.pad(x2d, ((0, Np - N), (0, 0)))
    out = pl.pallas_call(
        _output_mlp_kernel,
        out_shape=jax.ShapeDtypeStruct((Np, Op), jnp.float32),
        grid_spec=pltpu.PrefetchScalarGridSpec(
            num_scalar_prefetch=0,
            grid=(Np // tile,),
            in_specs=[
                pl.BlockSpec((tile, Hp), lambda i: (i, 0)),
                pl.BlockSpec((Hp, Ep), lambda i: (0, 0)),
                pl.BlockSpec((1, Ep), lambda i: (0, 0)),
                pl.BlockSpec((Ep, Op), lambda i: (0, 0)),
                pl.BlockSpec((1, Op), lambda i: (0, 0)),
            ],
            out_specs=pl.BlockSpec((tile, Op), lambda i: (i, 0)),
        ),
        compiler_params=_cparams("parallel"),
    )(x2d, w1_t, b1.reshape(1, -1), w2_t, b2.reshape(1, -1))
    return out[:N]


def gru_recurrence(gi_tm, h0, w_hh_t, b_hh_n, chunk):
    # gi_tm: (T_pad, Bp, 3*Hp) time-major precomputed input gates.
    T_pad, Bp, G = gi_tm.shape
    Hp = G // 3
    return pl.pallas_call(
        _gru_rec_kernel,
        out_shape=jax.ShapeDtypeStruct((T_pad, Bp, Hp), jnp.float32),
        grid_spec=pltpu.PrefetchScalarGridSpec(
            num_scalar_prefetch=0,
            grid=(T_pad // chunk,),
            in_specs=[
                pl.BlockSpec((chunk, Bp, G), lambda c: (c, 0, 0)),
                pl.BlockSpec((Bp, Hp), lambda c: (0, 0)),
                pl.BlockSpec((Hp, G), lambda c: (0, 0)),
                pl.BlockSpec((1, Hp), lambda c: (0, 0)),
            ],
            out_specs=pl.BlockSpec((chunk, Bp, Hp), lambda c: (c, 0, 0)),
            scratch_shapes=[pltpu.VMEM((Bp, Hp), jnp.float32)],
        ),
        compiler_params=_cparams("arbitrary"),   # sequential hidden-state carry
    )(gi_tm, h0, w_hh_t, b_hh_n.reshape(1, -1))


# ---------------------------------------------------------------------------
# Parameter construction (mirrors GRU_plain.__init__, padded for TPU layout)
# ---------------------------------------------------------------------------

def _xavier_uniform(key, shape, gain):
    # shape = (fan_out, fan_in), matching torch.nn.Linear / GRU weight layout.
    fan_out, fan_in = shape
    bound = gain * (6.0 / (fan_in + fan_out)) ** 0.5
    return jax.random.uniform(key, shape, jnp.float32, -bound, bound)


def _linear_bias(key, fan_in, n):
    bound = 1.0 / (fan_in ** 0.5)
    return jax.random.uniform(key, (n,), jnp.float32, -bound, bound)


def _pad_linear_t(w, in_pad, out_pad):
    # w: (out, in) PyTorch layout -> padded (in_pad, out_pad) transposed.
    out_dim, in_dim = w.shape
    w = jnp.pad(w, ((0, out_pad - out_dim), (0, in_pad - in_dim)))
    return w.T


def _pad_gate_weight_t(w, in_pad, hp):
    # w: (3H, in) PyTorch GRU layout (gates r, z, n) -> (in_pad, 3*hp), each gate
    # block padded to hp so slices land on 128-lane boundaries.
    three_h, in_dim = w.shape
    h = three_h // 3
    w = w.reshape(3, h, in_dim)
    w = jnp.pad(w, ((0, 0), (0, hp - h), (0, in_pad - in_dim)))
    return jnp.transpose(w, (2, 0, 1)).reshape(in_pad, 3 * hp)


def _pad_gate_bias(b, hp):
    h = b.shape[0] // 3
    b = b.reshape(3, h)
    return jnp.pad(b, ((0, 0), (0, hp - h)))          # (3, hp)


def init_params(key, input_size, embedding_size, hidden_size, num_layers,
                output_size):
    I, E, H, O = input_size, embedding_size, hidden_size, output_size
    Ip, Ep, Hp, Op = (_round_up(d, 128) for d in (I, E, H, O))
    gain_relu = 2.0 ** 0.5      # nn.init.calculate_gain('relu')
    gain_sigmoid = 1.0          # nn.init.calculate_gain('sigmoid')
    keys = iter(jax.random.split(key, 6 + 2 * num_layers))

    params = {"meta": dict(I=I, E=E, H=H, O=O, Ip=Ip, Ep=Ep, Hp=Hp, Op=Op)}

    # self.input = nn.Linear(input_size, embedding_size); weight xavier(relu gain)
    w_in = _xavier_uniform(next(keys), (E, I), gain_relu)
    b_in = _linear_bias(next(keys), I, E)
    params["w_in_t"] = _pad_linear_t(w_in, Ip, Ep).astype(MXU_DTYPE)
    params["b_in"] = jnp.pad(b_in, (0, Ep - E))

    # GRU layers: weight xavier(sigmoid gain), bias = 0.25
    params["gru"] = []
    for layer in range(num_layers):
        in_dim = E if layer == 0 else H
        in_pad = Ep if layer == 0 else Hp
        w_ih = _xavier_uniform(next(keys), (3 * H, in_dim), gain_sigmoid)
        w_hh = _xavier_uniform(next(keys), (3 * H, H), gain_sigmoid)
        b_ih = jnp.full((3 * H,), 0.25, jnp.float32)
        b_hh = jnp.full((3 * H,), 0.25, jnp.float32)
        b_ih_p = _pad_gate_bias(b_ih, Hp)               # (3, Hp)
        b_hh_p = _pad_gate_bias(b_hh, Hp)               # (3, Hp)
        params["gru"].append(dict(
            w_ih_t=_pad_gate_weight_t(w_ih, in_pad, Hp).astype(MXU_DTYPE),
            w_hh_t=_pad_gate_weight_t(w_hh, Hp, Hp).astype(MXU_DTYPE),
            # fold b_hr/b_hz into the precomputed gi; keep b_hn separate
            b_gi=(b_ih_p + b_hh_p.at[2].set(0.0)).reshape(3 * Hp),
            b_hh_n=b_hh_p[2],
        ))

    # self.output = Linear(H,E) -> ReLU -> Linear(E,O); weight xavier(relu gain)
    w1 = _xavier_uniform(next(keys), (E, H), gain_relu)
    b1 = _linear_bias(next(keys), H, E)
    w2 = _xavier_uniform(next(keys), (O, E), gain_relu)
    b2 = _linear_bias(next(keys), E, O)
    params["w1_t"] = _pad_linear_t(w1, Hp, Ep).astype(MXU_DTYPE)
    params["b1"] = jnp.pad(b1, (0, Ep - E))
    params["w2_t"] = _pad_linear_t(w2, Ep, Op).astype(MXU_DTYPE)
    params["b2"] = jnp.pad(b2, (0, Op - O))
    return params


# ---------------------------------------------------------------------------
# Forward (mirrors GRU_plain.forward with pack=False)
# ---------------------------------------------------------------------------

def gru_plain_forward(params, x, h0):
    # x: (B, T, input_size) batch-first; h0: (num_layers, B, hidden_size).
    meta = params["meta"]
    B, T, _ = x.shape
    H, O = meta["H"], meta["O"]
    Ip, Hp, Op = meta["Ip"], meta["Hp"], meta["Op"]
    Bp = _round_up(B, 8)

    chunk = min(32, T)
    T_pad = _round_up(T, chunk)

    # Only the small raw input is transposed to time-major; activations stay
    # time-major between layers (free reshapes, no big HBM transposes).
    x_tm = jnp.transpose(x, (1, 0, 2))                         # (T, B, I)
    x_tm = jnp.pad(x_tm, ((0, T_pad - T), (0, Bp - B), (0, Ip - x.shape[2])))
    x2d = x_tm.reshape(T_pad * Bp, Ip)

    h0_p = jnp.pad(h0, ((0, 0), (0, Bp - B), (0, Hp - H)))

    finals = []
    layer_in = None
    for layer, p in enumerate(params["gru"]):
        if layer == 0:
            # embedding Linear+ReLU fused into the layer-0 input-gate projection
            gi2d = embed_gi(x2d, params["w_in_t"], params["b_in"],
                            p["w_ih_t"], p["b_gi"])
        else:
            gi2d = gi_proj(layer_in, p["w_ih_t"], p["b_gi"])
        gi_tm = gi2d.reshape(T_pad, Bp, 3 * Hp)
        hs = gru_recurrence(gi_tm, h0_p[layer], p["w_hh_t"], p["b_hh_n"], chunk)
        finals.append(hs[T - 1, :B, :H])
        layer_in = hs.reshape(T_pad * Bp, Hp)                  # free time-major view

    hidden_final = jnp.stack(finals)                           # == self.hidden

    y2d = output_mlp(layer_in, params["w1_t"], params["b1"],
                     params["w2_t"], params["b2"])             # (T_pad*Bp, Op)
    y = y2d.reshape(T_pad, Bp, Op)[:T, :B, :O]
    y = jnp.transpose(y, (1, 0, 2))                            # back to batch-first
    return y, hidden_final

# TODO(synk): pack_padded_sequence / pad_packed_sequence (pack=True path) has no
# clean Pallas equivalent; only the pack=False path is implemented.


if __name__ == "__main__":
    B, T = 2, 8
    input_size, embedding_size, hidden_size = 16, 32, 32
    num_layers, output_size = 2, 16

    key = jax.random.PRNGKey(0)
    k_param, k_x = jax.random.split(key)

    params = init_params(k_param, input_size, embedding_size, hidden_size,
                         num_layers, output_size)
    x = jax.random.normal(k_x, (B, T, input_size), jnp.float32)
    h0 = jnp.zeros((num_layers, B, hidden_size), jnp.float32)  # init_hidden(batch)

    y, hidden = gru_plain_forward(params, x, h0)
    jax.block_until_ready((y, hidden))
    assert y.shape == (B, T, output_size)
    assert hidden.shape == (num_layers, B, hidden_size)
    assert bool(jnp.all(jnp.isfinite(y)))
    print("KERNEL_OK")
</pallas_src>

<mosaic_0001>
module attributes {stable_mosaic.version = 11 : i64} {
  func.func @_embed_gi_kernel(%arg0: i32, %arg1: memref<64x128xf32, #tpu.memory_space<vmem>>, %arg2: memref<128x128xbf16, #tpu.memory_space<vmem>>, %arg3: memref<1x128xf32, #tpu.memory_space<vmem>>, %arg4: memref<128x384xbf16, #tpu.memory_space<vmem>>, %arg5: memref<1x384xf32, #tpu.memory_space<vmem>>, %arg6: memref<64x384xf32, #tpu.memory_space<vmem>>) attributes {dimension_semantics = [#tpu.dimension_semantics<parallel>], iteration_bounds = array<i64: 1>, scalar_prefetch = 0 : i64, scratch_operands = 0 : i64, tpu.core_type = #tpu.core_type<tc>, window_params = [{transform_indices = @transform_0, window_bounds = array<i64: 64, 128>}, {pipeline_mode = #tpu.pipeline_mode<synchronous>, transform_indices = @transform_1, window_bounds = array<i64: 128, 128>}, {pipeline_mode = #tpu.pipeline_mode<synchronous>, transform_indices = @transform_2, window_bounds = array<i64: 1, 128>}, {pipeline_mode = #tpu.pipeline_mode<synchronous>, transform_indices = @transform_3, window_bounds = array<i64: 128, 384>}, {pipeline_mode = #tpu.pipeline_mode<synchronous>, transform_indices = @transform_4, window_bounds = array<i64: 1, 384>}, {transform_indices = @transform_5, window_bounds = array<i64: 64, 384>}]} {
    %c0 = arith.constant 0 : index
    %c0_0 = arith.constant 0 : index
    %0 = vector.load %arg1[%c0, %c0_0] : memref<64x128xf32, #tpu.memory_space<vmem>>, vector<64x128xf32>
    %1 = arith.truncf %0 : vector<64x128xf32> to vector<64x128xbf16>
    %c0_1 = arith.constant 0 : index
    %c0_2 = arith.constant 0 : index
    %2 = vector.load %arg2[%c0_1, %c0_2] : memref<128x128xbf16, #tpu.memory_space<vmem>>, vector<128x128xbf16>
    %cst = arith.constant dense<0.000000e+00> : vector<64x128xf32>
    %3 = tpu.matmul %1, %2, %cst {dimension_numbers = #tpu.dot_dimension_numbers<[1], [0], [0], [1], [0, 0, 1, 1], [], []>} : vector<64x128xbf16>, vector<128x128xbf16>, vector<64x128xf32> -> vector<64x128xf32>
    %c0_3 = arith.constant 0 : index
    %c0_4 = arith.constant 0 : index
    %4 = vector.load %arg3[%c0_3, %c0_4] : memref<1x128xf32, #tpu.memory_space<vmem>>, vector<1x128xf32>
    %5 = vector.broadcast %4 : vector<1x128xf32> to vector<64x128xf32>
    %6 = arith.addf %3, %5 : vector<64x128xf32>
    %cst_5 = arith.constant 0.000000e+00 : f32
    %7 = vector.broadcast %cst_5 : f32 to vector<64x128xf32>
    %8 = arith.maximumf %6, %7 : vector<64x128xf32>
    %9 = arith.truncf %8 : vector<64x128xf32> to vector<64x128xbf16>
    %c0_6 = arith.constant 0 : index
    %c0_7 = arith.constant 0 : index
    %10 = vector.load %arg4[%c0_6, %c0_7] : memref<128x384xbf16, #tpu.memory_space<vmem>>, vector<128x384xbf16>
    %cst_8 = arith.constant dense<0.000000e+00> : vector<64x384xf32>
    %11 = tpu.matmul %9, %10, %cst_8 {dimension_numbers = #tpu.dot_dimension_numbers<[1], [0], [0], [1], [0, 0, 1, 1], [], []>} : vector<64x128xbf16>, vector<128x384xbf16>, vector<64x384xf32> -> vector<64x384xf32>
    %c0_9 = arith.constant 0 : index
    %c0_10 = arith.constant 0 : index
    %12 = vector.load %arg5[%c0_9, %c0_10] : memref<1x384xf32, #tpu.memory_space<vmem>>, vector<1x384xf32>
    %13 = vector.broadcast %12 : vector<1x384xf32> to vector<64x384xf32>
    %14 = arith.addf %11, %13 : vector<64x384xf32>
    %c0_11 = arith.constant 0 : index
    %c0_12 = arith.constant 0 : index
    %15 = vector.load %arg6[%c0_11, %c0_12] : memref<64x384xf32, #tpu.memory_space<vmem>>, vector<64x384xf32>
    tpu.vector_store %arg6[%c0_11, %c0_12], %14 {strides = array<i32>} : memref<64x384xf32, #tpu.memory_space<vmem>>, vector<64x384xf32>,
    return
  }
  func.func @transform_0(%arg0: i32) -> (i32, i32) {
    %c0_i32 = arith.constant 0 : i32
    %c0_i32_0 = arith.constant 0 : i32
    return %arg0, %c0_i32 : i32, i32
  }
  func.func @transform_1(%arg0: i32) -> (i32, i32) {
    %c0_i32 = arith.constant 0 : i32
    %c0_i32_0 = arith.constant 0 : i32
    %c0_i32_1 = arith.constant 0 : i32
    return %c0_i32, %c0_i32_0 : i32, i32
  }
  func.func @transform_2(%arg0: i32) -> (i32, i32) {
    %c0_i32 = arith.constant 0 : i32
    %c0_i32_0 = arith.constant 0 : i32
    %c0_i32_1 = arith.constant 0 : i32
    return %c0_i32, %c0_i32_0 : i32, i32
  }
  func.func @transform_3(%arg0: i32) -> (i32, i32) {
    %c0_i32 = arith.constant 0 : i32
    %c0_i32_0 = arith.constant 0 : i32
    %c0_i32_1 = arith.constant 0 : i32
    return %c0_i32, %c0_i32_0 : i32, i32
  }
  func.func @transform_4(%arg0: i32) -> (i32, i32) {
    %c0_i32 = arith.constant 0 : i32
    %c0_i32_0 = arith.constant 0 : i32
    %c0_i32_1 = arith.constant 0 : i32
    return %c0_i32, %c0_i32_0 : i32, i32
  }
  func.func @transform_5(%arg0: i32) -> (i32, i32) {
    %c0_i32 = arith.constant 0 : i32
    %c0_i32_0 = arith.constant 0 : i32
    return %arg0, %c0_i32 : i32, i32
  }
}

</mosaic_0001>

<bundles_post_ra>
// kernel: tpu_custom_call.1
= control target key start
LH: loop header
LB: loop body
LE: loop exit
PB: predicated region body
PF: predicated region fallthrough
CT: control target
= control target key end

     0   :  { %10 = vsyncpa [#allocation3], 0  ;;  %s953_s0 = inlined_call_operand.hbm [shape: f32[64,128], index: 0, kind: input, shape index: {}]   ;;  %s954_s1 = inlined_call_operand.hbm [shape: bf16[128,128], index: 1, kind: input, shape index: {}]   ;;  %s955_s2 = inlined_call_operand.vmem [shape: f32[1,128], index: 2, kind: input, shape index: {}]   ;;  %s956_s3 = inlined_call_operand.hbm [shape: bf16[128,384], index: 3, kind: input, shape index: {}]   ;;  %s957_s4 = inlined_call_operand.vmem [shape: f32[1,384], index: 4, kind: input, shape index: {}]   ;;  %s958_s5 = inlined_call_operand.hbm [shape: f32[64,384], index: 5, kind: output, shape index: {}]  }
   0x1   :  { %11 = vsyncpa [#allocation6], 0 }
   0x2   :  { %12 = vsyncpa [#allocation4], 0  ;;  %s840_s18 = smov [#allocation5]  }
   0x3   :  { %s30_s19 = sshll.u32 %s840_s18, 4  ;;  %s31_s19 = int_to_ptr.vmem [resolvable:$true] %s30_s19 }
   0x4   :  { %s762_s20 = scalar_lea.vmem %s31_s19, 1024  ;;  %p767_p1 = scmp.lt.s32.totalorder %s31_s19, %s31_s19 }
   0x5   :  { %p763_p0 = scmp.ne.s32.totalorder %s31_s19, %s762_s20  ;;  %p768_p2 = scmp.lt.s32.totalorder %s762_s20, %s762_s20 }
   0x7   :  { %p769_p3 = por %p768_p2, %p767_p1 }
   0x9   :  { %p770_p4 = pnand %p769_p3, %p763_p0 }
   0xb   :  { %773 = shalt.err (!%p770_p4)
}
   0xc   :  { %s841_s21 = smov 64   ;;  %s842_s22 = smov 4  }
   0xd   :  { %36 = dma.hbm_to_vmem [thread:$0]  %s954_s1, 1024, %s31_s19, [#allocation6], %s841_s21, %s841_s21, %s842_s22  }
   0xe   :  { %s843_s25 = smov [#allocation2]  }
   0xf   :  { %s18_s26 = sshll.u32 %s843_s25, 4  ;;  %s19_s26 = int_to_ptr.vmem [resolvable:$true] %s18_s26 }
  0x10   :  { %s782_s27 = scalar_lea.vmem %s19_s26, 1024  ;;  %p787_p6 = scmp.lt.s32.totalorder %s19_s26, %s19_s26 }
  0x11   :  { %p783_p5 = scmp.ne.s32.totalorder %s19_s26, %s782_s27  ;;  %p788_p7 = scmp.lt.s32.totalorder %s782_s27, %s782_s27 }
  0x13   :  { %p789_p8 = por %p788_p7, %p787_p6 }
  0x15   :  { %p790_p9 = pnand %p789_p8, %p783_p5 }
  0x17   :  { %793 = shalt.err (!%p790_p9)
}
  0x18   :  { %s844_s28 = smov 128   ;;  %s845_s29 = smov 8  }
  0x19   :  { %24 = dma.hbm_to_vmem [thread:$0]  %s953_s0, 1024, %s19_s26, [#allocation3], %s844_s28, %s844_s28, %s845_s29  }
  0x1a   :  { %s846_s7 = smov [#allocation7]  }
  0x1b   :  { %s44_s8 = sshll.u32 %s846_s7, 4  ;;  %s45_s8 = int_to_ptr.vmem [resolvable:$true] %s44_s8 }
  0x1c   :  { %s802_s1 = scalar_lea.vmem %s45_s8, 3072  ;;  %p807_p11 = scmp.lt.s32.totalorder %s45_s8, %s45_s8 }
  0x1d   :  { %p803_p10 = scmp.ne.s32.totalorder %s45_s8, %s802_s1  ;;  %p808_p12 = scmp.lt.s32.totalorder %s802_s1, %s802_s1 }
  0x1f   :  { %p809_p13 = por %p808_p12, %p807_p11 }
  0x21   :  { %p810_p0 = pnand %p809_p13, %p803_p10 }
  0x23   :  { %813 = shalt.err (!%p810_p0)
}
  0x24   :  { %s847_s9 = smov 192   ;;  %s848_s10 = smov 12  }
  0x25   :  { %50 = dma.hbm_to_vmem [thread:$0]  %s956_s3, 3072, %s45_s8, [#allocation6], %s847_s9, %s847_s9, %s848_s10  }
  0x26   :  { %834 = dma.done.wait [#allocation3], 1024  }
  0x27   :  { %835 = vsyncadd [#allocation3], 4294966272 }
  0x28   :  { %836 = dma.done.wait [#allocation6], 4096  }
  0x29   :  { %837 = vsyncadd [#allocation6], 4294963200  ;;  %v714_v0 = vld [vmem:[#allocation5 + $0x38] sm:$0xff]   ;;  %v715_v1 = vld [vmem:[#allocation5 + $0x30] sm:$0xff]   ;;  %v849_v44 = vmov 0  }
  0x2a   :  { %637 = vmatprep.subr.bf16.mxu0 %v714_v0  ;;  %v716_v2 = vld [vmem:[#allocation5 + $0x28] sm:$0xff]   ;;  %v717_v3 = vld [vmem:[#allocation5 + $0x20] sm:$0xff]   ;;  %v718_v9 = vld [vmem:[#allocation5 + $0x18] sm:$0xff]   ;;  %432 = vmatprep.mubr.bf16.mxu1 %v849_v44 }
  0x2b   :  { %638 = vmatpush3.bf16.msra.mxu0 %v714_v0  ;;  %v63_v4 = vld [vmem:[#allocation2] sm:$0xff]  ;;  %v64_v5 = vld [vmem:[#allocation2 + $0x8] sm:$0xff]  ;;  %v728_v11 = vld [vmem:[#allocation7 + $0x90] ss:$12 sps:$4 sm:$0xff]  }
  0x2c   :  { %639 = vmatprep.subr.bf16.mxu0 %v715_v1  ;;  %v71_v6 = vpack.c.bf16 %v64_v5, %v63_v4  ;;  %v722_v7 = vld [vmem:[#allocation7 + $0xac] ss:$12 sps:$4 sm:$0xff]   ;;  %v724_v8 = vld [vmem:[#allocation7 + $0xa8] ss:$12 sps:$4 sm:$0xff]   ;;  %v734_v15 = vld [vmem:[#allocation7 + $0x64] ss:$12 sps:$4 sm:$0xff]  }
  0x2d   :  { %400 = vmatprep.subr.bf16.mxu1 %v722_v7  ;;  %v726_v10 = vld [vmem:[#allocation7 + $0x94] ss:$12 sps:$4 sm:$0xff]   ;;  %v730_v13 = vld [vmem:[#allocation7 + $0x7c] ss:$12 sps:$4 sm:$0xff]   ;;  %v732_v14 = vld [vmem:[#allocation7 + $0x78] ss:$12 sps:$4 sm:$0xff]  }
  0x2e   :  { %653 = vmatprep.mubr.bf16.mxu0 %v71_v6  ;;  %401 = vmatpush1.bf16.msra.mxu1 %v724_v8  ;;  %v719_v12 = vld [vmem:[#allocation5 + $0x10] sm:$0xff]   ;;  %v720_v16 = vld [vmem:[#allocation5 + $0x8] sm:$0xff]   ;;  %v721_v18 = vld [vmem:[#allocation5] sm:$0xff]  }
  0x2f   :  { %640 = vmatpush3.bf16.msra.mxu0 %v715_v1  ;;  %402 = vmatprep.subr.bf16.mxu1 %v726_v10  ;;  %v736_v17 = vld [vmem:[#allocation7 + $0x60] ss:$12 sps:$4 sm:$0xff]   ;;  %v740_v20 = vld [vmem:[#allocation7 + $0x48] ss:$12 sps:$4 sm:$0xff]   ;;  %v66_v22 = vld [vmem:[#allocation2 + $0x18] sm:$0xff]  ;;  %v257_v10 = vlaneseq }
  0x30   :  { %641 = vmatprep.subr.bf16.mxu0 %v716_v2  ;;  %v738_v19 = vld [vmem:[#allocation7 + $0x4c] ss:$12 sps:$4 sm:$0xff]   ;;  %v65_v21 = vld [vmem:[#allocation2 + $0x10] sm:$0xff]  ;;  %v67_v23 = vld [vmem:[#allocation2 + $0x20] sm:$0xff] }
  0x31   :  { %v68_v24 = vld [vmem:[#allocation2 + $0x28] sm:$0xff]  ;;  %v892_v25 = vld [vmem:[#allocation7 + $0xb0] ss:$12 sps:$4 sm:$0xff]   ;;  %v72_v26 = vpack.c.bf16 %v66_v22, %v65_v21  ;;  %v895_v28 = vld [vmem:[#allocation7 + $0x98] ss:$12 sps:$4 sm:$0xff]  }
  0x32   :  { %403 = vmatpush1.bf16.msra.mxu1 %v728_v11  ;;  %v73_v27 = vpack.c.bf16 %v68_v24, %v67_v23  ;;  %v69_v29 = vld [vmem:[#allocation2 + $0x30] sm:$0xff]  ;;  %v70_v30 = vld [vmem:[#allocation2 + $0x38] sm:$0xff]  ;;  %v899_v31 = vld [vmem:[#allocation7 + $0x80] ss:$12 sps:$4 sm:$0xff]   ;;  %v258_v11 = vshrl.u32 %v257_v10, 7 }
  0x33   :  { %642 = vmatpush3.bf16.msra.mxu0 %v716_v2  ;;  %404 = vmatprep.subr.bf16.mxu1 %v730_v13  ;;  %v74_v32 = vpack.c.bf16 %v70_v30, %v69_v29  ;;  %v903_v33 = vld [vmem:[#allocation7 + $0x68] ss:$12 sps:$4 sm:$0xff]   ;;  %v907_v34 = vld [vmem:[#allocation7 + $0x50] ss:$12 sps:$4 sm:$0xff]   ;;  %v912_v37 = vld [vmem:[#allocation7 + $0x38] ss:$12 sps:$4 sm:$0xff]  }
  0x34   :  { %643 = vmatprep.subr.bf16.mxu0 %v717_v3  ;;  %v742_v35 = vld [vmem:[#allocation7 + $0x34] ss:$12 sps:$4 sm:$0xff]   ;;  %v744_v36 = vld [vmem:[#allocation7 + $0x30] ss:$12 sps:$4 sm:$0xff]   ;;  %v748_v39 = vld [vmem:[#allocation7 + $0x18] ss:$12 sps:$4 sm:$0xff]  }
  0x35   :  { %v746_v38 = vld [vmem:[#allocation7 + $0x1c] ss:$12 sps:$4 sm:$0xff]   ;;  %v916_v40 = vld [vmem:[#allocation7 + $0x20] ss:$12 sps:$4 sm:$0xff]   ;;  %v750_v41 = vld [vmem:[#allocation7 + $0x4] ss:$12 sps:$4 sm:$0xff]  }
  0x36   :  { %405 = vmatpush1.bf16.msra.mxu1 %v732_v14  ;;  %v752_v42 = vld [vmem:[#allocation7] ss:$12 sps:$4 sm:$0xff]   ;;  %v753_v43 = vld [vmem:[#allocation7 + $0x8] ss:$12 sps:$4 sm:$0xff]   ;;  %v267_v14 = vsub.s32 2, %v258_v11 }
  0x37   :  { %644 = vmatpush3.bf16.msra.mxu0 %v717_v3  ;;  %406 = vmatprep.subr.bf16.mxu1 %v734_v15  ;;  %v580_v47 = vld [vmem:[%s955_s2] ss:$0 sm:$0xff]  ;;  %v263_v15 = vsub.s32 1, %v258_v11 }
  0x38   :  { %645 = vmatprep.subr.bf16.mxu0 %v718_v9  ;;  %v255_v13 = vld [vmem:[%s957_s4] sm:$0x7]  ;;  %s850_s4 = smov [#allocation8]  }
  0x39   :  { %s567_s14 = sshll.u32 %s850_s4, 4  ;;  %s568_s14 = int_to_ptr.vmem [resolvable:$true] %s567_s14 }
  0x3a   :  { %407 = vmatpush1.bf16.msra.mxu1 %v736_v17  ;;  %v940_v17 = vrot.slane %v255_v13, %v267_v14  ;;  %s814_s15 = scalar_lea.vmem %s568_s14, 3072  ;;  %p819_p2 = scmp.lt.s32.totalorder %s568_s14, %s568_s14 }
  0x3b   :  { %646 = vmatpush3.bf16.msra.mxu0 %v718_v9  ;;  %408 = vmatprep.subr.bf16.mxu1 %v738_v19  ;;  %p815_p1 = scmp.ne.s32.totalorder %s568_s14, %s814_s15  ;;  %p820_p3 = scmp.lt.s32.totalorder %s814_s15, %s814_s15 }
  0x3c   :  { %647 = vmatprep.subr.bf16.mxu0 %v719_v12 }
  0x3d   :  { %p821_p4 = por %p820_p3, %p819_p2 }
  0x3e   :  { %409 = vmatpush1.bf16.msra.mxu1 %v740_v20 }
  0x3f   :  { %648 = vmatpush3.bf16.msra.mxu0 %v719_v12  ;;  %410 = vmatprep.subr.bf16.mxu1 %v742_v35  ;;  %v259_v12 = vsub.s32 0, %v258_v11  ;;  %p822_p5 = pnand %p821_p4, %p815_p1 }
  0x40   :  { %649 = vmatprep.subr.bf16.mxu0 %v720_v16 }
  0x42   :  { %411 = vmatpush1.bf16.msra.mxu1 %v744_v36 }
  0x43   :  { %650 = vmatpush3.bf16.msra.mxu0 %v720_v16  ;;  %412 = vmatprep.subr.bf16.mxu1 %v746_v38  ;;  %v260_v16 = vrot.slane %v255_v13, %v259_v12 }
  0x44   :  { %651 = vmatprep.subr.bf16.mxu0 %v721_v18 }
  0x46   :  { %413 = vmatpush1.bf16.msra.mxu1 %v748_v39 }
  0x47   :  { %652 = vmatpush3.bf16.msra.mxu0 %v721_v18  ;;  %414 = vmatprep.subr.bf16.mxu1 %v750_v41  ;;  %v264_v18 = vrot.slane %v255_v13, %v263_v15 }
  0x48   :  { %661 = vmatprep.subr.bf16.mxu0 %v892_v25 }
  0x4a   :  { %654 = vmatmul.mubr.bf16.vlgmr.msra.gmra.mxu0 %v72_v26  ;;  %415 = vmatpush1.bf16.msra.mxu1 %v752_v42 }
  0x4b   :  { %657 = vmatprep.mubr.bf16.mxu0 %v73_v27  ;;  %662 = vmatpush3.bf16.msra.mxu0 %v892_v25 }
  0x4c   :  { %663 = vmatprep.subr.bf16.mxu0 %v895_v28  ;;  %685 = vmatprep.subr.bf16.mxu1 %v892_v25 }
  0x4f   :  { %664 = vmatpush3.bf16.msra.mxu0 %v895_v28 }
  0x50   :  { %665 = vmatprep.subr.bf16.mxu0 %v899_v31 }
  0x52   :  { %658 = vmatmul.mubr.bf16.gmra.mxu0 %v74_v32 }
  0x53   :  { %666 = vmatpush3.bf16.msra.mxu0 %v899_v31 }
  0x54   :  { %667 = vmatprep.subr.bf16.mxu0 %v903_v33 }
  0x57   :  { %668 = vmatpush3.bf16.msra.mxu0 %v903_v33 }
  0x58   :  { %669 = vmatprep.subr.bf16.mxu0 %v907_v34 }
  0x5b   :  { %670 = vmatpush3.bf16.msra.mxu0 %v907_v34 }
  0x5c   :  { %671 = vmatprep.subr.bf16.mxu0 %v912_v37 }
  0x5f   :  { %672 = vmatpush3.bf16.msra.mxu0 %v912_v37 }
  0x60   :  { %673 = vmatprep.subr.bf16.mxu0 %v916_v40 }
  0x63   :  { %674 = vmatpush3.bf16.msra.mxu0 %v916_v40 }
  0x64   :  { %675 = vmatprep.subr.bf16.mxu0 %v753_v43 }
  0x67   :  { %676 = vmatpush3.bf16.msra.mxu0 %v753_v43 }
 0x10a   :  { %v655_v45 = vpop.f32.mrf.mxu0 }
 0x10b   :  { %v189_v51 = vadd.f32 %v655_v45, %v580_v47 }
 0x10c   :  { %v180_v46 = vpop.f32.mrf.mxu0 }
 0x10d   :  { %v181_v49 = vadd.f32 %v580_v47, %v180_v46  ;;  %v213_v58 = vmax.f32 %v189_v51, 0.0 }
 0x10e   :  { %v656_v48 = vpop.f32.mrf.mxu0 }
 0x10f   :  { %v192_v50 = vadd.f32 %v656_v48, %v580_v47  ;;  %v211_v56 = vmax.f32 %v181_v49, 0.0 }
 0x110   :  { %v183_v52 = vpop.f32.mrf.mxu0 }
 0x111   :  { %v184_v53 = vadd.f32 %v580_v47, %v183_v52  ;;  %v214_v54 = vmax.f32 %v192_v50, 0.0 }
 0x112   :  { %v659_v55 = vpop.f32.mrf.mxu0 }
 0x113   :  { %v212_v57 = vmax.f32 %v184_v53, 0.0  ;;  %v220_v61 = vpack.c.bf16 %v214_v54, %v213_v58  ;;  %v205_v4 = vadd.f32 %v659_v55, %v580_v47 }
 0x114   :  { %v196_v59 = vpop.f32.mrf.mxu0 }
 0x115   :  { %v219_v60 = vpack.c.bf16 %v212_v57, %v211_v56  ;;  %v197_v0 = vadd.f32 %v580_v47, %v196_v59  ;;  %v217_v7 = vmax.f32 %v205_v4, 0.0 }
 0x116   :  { %v660_v62 = vpop.f32.mrf.mxu0 }
 0x117   :  { %433 = vmatmul.mubr.bf16.vlgmr.msra.gmra.mxu1 %v219_v60  ;;  %677 = vmatprep.mubr.bf16.mxu0 %v219_v60  ;;  %v215_v2 = vmax.f32 %v197_v0, 0.0  ;;  %v208_v5 = vadd.f32 %v660_v62, %v580_v47 }
 0x118   :  { %693 = vmatpush3.bf16.msra.mxu1 %v892_v25  ;;  %678 = vmatmul.mubr.bf16.vlgmr.msra.gmra.mxu0 %v220_v61  ;;  %v199_v63 = vpop.f32.mrf.mxu0 }
 0x119   :  { %686 = vmatprep.subr.bf16.mxu1 %v895_v28  ;;  %442 = vmatprep.mubr.bf16.mxu1 %v849_v44  ;;  %v200_v1 = vadd.f32 %v580_v47, %v199_v63  ;;  %v218_v8 = vmax.f32 %v208_v5, 0.0 }
 0x11b   :  { %v216_v3 = vmax.f32 %v200_v1, 0.0  ;;  %v222_v9 = vpack.c.bf16 %v218_v8, %v217_v7 }
 0x11c   :  { %694 = vmatpush3.bf16.msra.mxu1 %v895_v28 }
 0x11d   :  { %687 = vmatprep.subr.bf16.mxu1 %v899_v31  ;;  %v221_v6 = vpack.c.bf16 %v216_v3, %v215_v2 }
 0x11f   :  { %443 = vmatmul.mubr.bf16.gmra.mxu1 %v220_v61 }
 0x120   :  { %695 = vmatpush3.bf16.msra.mxu1 %v899_v31  ;;  %452 = vmatprep.mubr.bf16.mxu1 %v849_v44 }
 0x121   :  { %688 = vmatprep.subr.bf16.mxu1 %v903_v33 }
 0x124   :  { %696 = vmatpush3.bf16.msra.mxu1 %v903_v33 }
 0x125   :  { %689 = vmatprep.subr.bf16.mxu1 %v907_v34 }
 0x127   :  { %453 = vmatmul.mubr.bf16.gmra.mxu1 %v221_v6 }
 0x128   :  { %697 = vmatpush3.bf16.msra.mxu1 %v907_v34  ;;  %462 = vmatprep.mubr.bf16.mxu1 %v849_v44 }
 0x129   :  { %690 = vmatprep.subr.bf16.mxu1 %v912_v37 }
 0x12c   :  { %698 = vmatpush3.bf16.msra.mxu1 %v912_v37 }
 0x12d   :  { %691 = vmatprep.subr.bf16.mxu1 %v916_v40 }
 0x12f   :  { %463 = vmatmul.mubr.bf16.gmra.mxu1 %v222_v9 }
 0x130   :  { %699 = vmatpush3.bf16.msra.mxu1 %v916_v40  ;;  %681 = vmatprep.mubr.bf16.mxu1 %v221_v6 }
 0x131   :  { %692 = vmatprep.subr.bf16.mxu1 %v753_v43 }
 0x134   :  { %700 = vmatpush3.bf16.msra.mxu1 %v753_v43 }
 0x137   :  { %682 = vmatmul.mubr.bf16.vlgmr.msra.gmra.mxu1 %v222_v9 }
 0x1d7   :  { %v434_v19 = vpop.f32.mrf.mxu1 }
 0x1d8   :  { %v435_v20 = vadd.f32 %v434_v19, %v260_v16  ;;  %v679_v21 = vpop.f32.mrf.mxu0 }
 0x1d9   :  { %v516_v22 = vadd.f32 %v679_v21, %v940_v17  ;;  %v436_v23 = vpop.f32.mrf.mxu1 }
 0x1da   :  { %538 = vst [vmem:[#allocation8] sm:$0xff] %v435_v20  ;;  %v437_v24 = vadd.f32 %v436_v23, %v264_v18  ;;  %v507_v25 = vpop.f32.mrf.mxu0 }
 0x1db   :  { %546 = vst [vmem:[#allocation8 + $0x40] sm:$0xff] %v516_v22  ;;  %v508_v26 = vadd.f32 %v507_v25, %v940_v17  ;;  %v438_v27 = vpop.f32.mrf.mxu1 }
 0x1dc   :  { %539 = vst [vmem:[#allocation8 + $0x8] sm:$0xff] %v437_v24  ;;  %v439_v28 = vadd.f32 %v438_v27, %v260_v16  ;;  %v680_v29 = vpop.f32.mrf.mxu0 }
 0x1dd   :  { %540 = vst [vmem:[#allocation8 + $0x10] sm:$0xff] %v508_v26  ;;  %v519_v30 = vadd.f32 %v680_v29, %v940_v17  ;;  %v440_v31 = vpop.f32.mrf.mxu1 }
 0x1de   :  { %541 = vst [vmem:[#allocation8 + $0x18] sm:$0xff] %v439_v28  ;;  %v441_v32 = vadd.f32 %v440_v31, %v264_v18  ;;  %v510_v33 = vpop.f32.mrf.mxu0 }
 0x1df   :  { %549 = vst [vmem:[#allocation8 + $0x58] sm:$0xff] %v519_v30  ;;  %v511_v34 = vadd.f32 %v510_v33, %v940_v17  ;;  %v444_v35 = vpop.f32.mrf.mxu1 }
 0x1e0   :  { %542 = vst [vmem:[#allocation8 + $0x20] sm:$0xff] %v441_v32  ;;  %v445_v36 = vadd.f32 %v444_v35, %v260_v16 }
 0x1e1   :  { %543 = vst [vmem:[#allocation8 + $0x28] sm:$0xff] %v511_v34  ;;  %v446_v37 = vpop.f32.mrf.mxu1 }
 0x1e2   :  { %544 = vst [vmem:[#allocation8 + $0x30] sm:$0xff] %v445_v36  ;;  %v447_v38 = vadd.f32 %v446_v37, %v264_v18 }
 0x1e3   :  { %v448_v39 = vpop.f32.mrf.mxu1 }
 0x1e4   :  { %545 = vst [vmem:[#allocation8 + $0x38] sm:$0xff] %v447_v38  ;;  %v449_v40 = vadd.f32 %v448_v39, %v260_v16 }
 0x1e5   :  { %v450_v41 = vpop.f32.mrf.mxu1 }
 0x1e6   :  { %547 = vst [vmem:[#allocation8 + $0x48] sm:$0xff] %v449_v40  ;;  %v451_v42 = vadd.f32 %v450_v41, %v264_v18 }
 0x1e7   :  { %v454_v43 = vpop.f32.mrf.mxu1 }
 0x1e8   :  { %548 = vst [vmem:[#allocation8 + $0x50] sm:$0xff] %v451_v42  ;;  %v455_v44 = vadd.f32 %v454_v43, %v260_v16 }
 0x1e9   :  { %v456_v45 = vpop.f32.mrf.mxu1 }
 0x1ea   :  { %550 = vst [vmem:[#allocation8 + $0x60] sm:$0xff] %v455_v44  ;;  %v457_v46 = vadd.f32 %v456_v45, %v264_v18 }
 0x1eb   :  { %v458_v47 = vpop.f32.mrf.mxu1 }
 0x1ec   :  { %551 = vst [vmem:[#allocation8 + $0x68] sm:$0xff] %v457_v46  ;;  %v459_v48 = vadd.f32 %v458_v47, %v260_v16 }
 0x1ed   :  { %v460_v49 = vpop.f32.mrf.mxu1 }
 0x1ee   :  { %553 = vst [vmem:[#allocation8 + $0x78] sm:$0xff] %v459_v48  ;;  %v461_v50 = vadd.f32 %v460_v49, %v264_v18 }
 0x1ef   :  { %v464_v51 = vpop.f32.mrf.mxu1 }
 0x1f0   :  { %554 = vst [vmem:[#allocation8 + $0x80] sm:$0xff] %v461_v50  ;;  %v465_v52 = vadd.f32 %v464_v51, %v260_v16 }
 0x1f1   :  { %v466_v53 = vpop.f32.mrf.mxu1 }
 0x1f2   :  { %556 = vst [vmem:[#allocation8 + $0x90] sm:$0xff] %v465_v52  ;;  %v467_v54 = vadd.f32 %v466_v53, %v264_v18 }
 0x1f3   :  { %v468_v55 = vpop.f32.mrf.mxu1 }
 0x1f4   :  { %557 = vst [vmem:[#allocation8 + $0x98] sm:$0xff] %v467_v54  ;;  %v469_v56 = vadd.f32 %v468_v55, %v260_v16 }
 0x1f5   :  { %v470_v57 = vpop.f32.mrf.mxu1 }
 0x1f6   :  { %559 = vst [vmem:[#allocation8 + $0xa8] sm:$0xff] %v469_v56  ;;  %v471_v58 = vadd.f32 %v470_v57, %v264_v18 }
 0x1f7   :  { %v683_v59 = vpop.f32.mrf.mxu1 }
 0x1f8   :  { %560 = vst [vmem:[#allocation8 + $0xb0] sm:$0xff] %v471_v58  ;;  %v532_v60 = vadd.f32 %v683_v59, %v940_v17 }
 0x1f9   :  { %v523_v61 = vpop.f32.mrf.mxu1 }
 0x1fa   :  { %558 = vst [vmem:[#allocation8 + $0xa0] sm:$0xff] %v532_v60  ;;  %v524_v62 = vadd.f32 %v523_v61, %v940_v17 }
 0x1fb   :  { %v684_v63 = vpop.f32.mrf.mxu1 }
 0x1fc   :  { %552 = vst [vmem:[#allocation8 + $0x70] sm:$0xff] %v524_v62  ;;  %v535_v0 = vadd.f32 %v684_v63, %v940_v17 }
 0x1fd   :  { %v526_v1 = vpop.f32.mrf.mxu1 }
 0x1fe   :  { %561 = vst [vmem:[#allocation8 + $0xb8] sm:$0xff] %v535_v0  ;;  %v527_v2 = vadd.f32 %v526_v1, %v940_v17 }
 0x200   :  { %555 = vst [vmem:[#allocation8 + $0x88] sm:$0xff] %v527_v2 }
 0x201   :  { %825 = shalt.err (!%p822_p5)
}
 0x202   :  { %s851_s16 = smov 384   ;;  %s852_s17 = smov 24  }
 0x203   :  { %573 = dma.vmem_to_hbm [thread:$0]  %s568_s14, 3072, %s958_s5, [#allocation4], %s851_s16, %s851_s16, %s852_s17  }
 0x204   :  { %838 = dma.done.wait [#allocation4], 3072  }
 0x205   :  { %839 = vsyncadd [#allocation4], 4294964224 }
 0x206   :  { %577 = vsyncpa [#allocation3], 1 }
 0x207   :  { %578 = vsyncpa [#allocation6], 1 }
 0x208   :  { %579 = vsyncpa [#allocation4], 1 }

</bundles_post_ra>
